<compile_context>
chip_gen: v5e
topology: v5e:2x2
jax: 0.10.0
libtpu: 0.0.40
codegen_flags: <defaults>
</compile_context>

<pallas_src>
import jax
import jax.numpy as jnp
from jax.experimental import pallas as pl
from jax.experimental.pallas import tpu as pltpu


NEGATIVE_SLOPE = 0.2
LANE = 128        # TPU lane width — pad all feature dims to a multiple of this
ROW_TILE = 256    # row-tile cap (vreg-pressure bound for the unrolled chain)


def _round_up(x, m):
    return ((x + m - 1) // m) * m


def _pad_to(a, rows, cols):
    """Zero-pad a 2-D array up to (rows, cols)."""
    r, c = a.shape
    return jnp.pad(a, ((0, rows - r), (0, cols - c)))


def _choose_row_tile(n):
    if n <= 8:
        return n
    # Aim for >= 2 grid steps so v7x's two TensorCores both get work,
    # keep 8-row sublane alignment, cap for vreg pressure.
    tile = _round_up(-(-n // 2), 8)
    return max(8, min(ROW_TILE, tile))


# ---------------------------------------------------------------------------
# One-time parameter preparation (padding / concat / bf16 cast — NOT per call)
# ---------------------------------------------------------------------------
def prepare_fused_params(params, weight_dtype=jnp.bfloat16):
    """Returns flat weight args (lane-padded, bf16) + per-layer meta."""
    flat = []
    meta = []
    in_dim = params["fcs"][0][0].shape[0]
    prev_w = in_dim  # first layer sees the unpadded input width
    for (w, b), w_res in zip(params["fcs"], params["res_fcs"]):
        d_out = w.shape[1]
        d_out_p = _round_up(d_out, LANE)
        wp = _pad_to(w, prev_w, d_out_p)
        bp = _pad_to(b, 1, d_out_p).astype(jnp.float32)
        if w_res is not None:
            # Fuse [W | W_res] -> a single lane-dense MXU push per layer;
            # the split inside the kernel is at a 128-lane boundary.
            wrp = _pad_to(w_res, prev_w, d_out_p)
            flat += [jnp.concatenate([wp, wrp], axis=1).astype(weight_dtype), bp]
            meta.append((True, d_out_p))
        else:
            flat += [wp.astype(weight_dtype), bp]
            meta.append((False, d_out_p))
        prev_w = d_out_p

    w_out, b_out = params["fc_out"]
    out_dim = w_out.shape[1]
    out_pad = _round_up(out_dim, LANE)
    flat += [_pad_to(w_out, prev_w, out_pad).astype(weight_dtype),
             _pad_to(b_out, 1, out_pad).astype(jnp.float32)]

    return {"args": flat, "meta": tuple(meta), "in_dim": in_dim,
            "out_dim": out_dim, "out_pad": out_pad}


# ---------------------------------------------------------------------------
# Fused kernel factory
# ---------------------------------------------------------------------------
def _make_fused_kernel(layer_meta):
    """layer_meta: tuple of (has_projected_residual, padded_d_out) per layer."""

    def kernel(x_ref, *refs):
        o_ref = refs[-1]
        refs = refs[:-1]

        x = x_ref[...].astype(jnp.float32)
        idx = 0
        for has_res, d_out_p in layer_meta:
            w = refs[idx][...]        # bf16, lane-padded
            b = refs[idx + 1][...]    # f32
            idx += 2
            xb = x.astype(w.dtype)    # bf16 MXU operands, f32 accumulation
            if has_res:
                hr = jnp.dot(xb, w, preferred_element_type=jnp.float32)
                h = hr[:, :d_out_p] + b      # split on a 128-lane boundary
                res = hr[:, d_out_p:]
            else:
                h = jnp.dot(xb, w, preferred_element_type=jnp.float32) + b
                res = x                      # identity residual (dims equal)
            h = jnp.where(h >= 0, h, NEGATIVE_SLOPE * h)  # LeakyReLU (f32 VPU)
            x = h + res

        w_out = refs[idx][...]
        b_out = refs[idx + 1][...]
        y = jnp.dot(x.astype(w_out.dtype), w_out,
                    preferred_element_type=jnp.float32) + b_out
        o_ref[...] = y.astype(o_ref.dtype)   # lane-dense (multiple-of-128) store

    return kernel


# ---------------------------------------------------------------------------
# pallas_call wrapper
# ---------------------------------------------------------------------------
def _row_spec(tile_n, d):
    return pl.BlockSpec((tile_n, d), lambda i: (i, 0), memory_space=pltpu.VMEM)


def _const_spec(shape, single_buffer):
    idx_map = lambda i: tuple(0 for _ in shape)
    if single_buffer:
        # Grid-invariant block: one resident buffer is enough.
        return pl.BlockSpec(shape, idx_map, memory_space=pltpu.VMEM,
                            pipeline_mode=pl.Buffered(1))
    return pl.BlockSpec(shape, idx_map, memory_space=pltpu.VMEM)


def residual_network_forward(fused, x):
    """Fused forward pass: all layers + fc_out in a single pallas_call."""
    n, d_in = x.shape
    assert d_in == fused["in_dim"]
    tile_n = _choose_row_tile(n)
    grid = (pl.cdiv(n, tile_n),)
    out_pad = fused["out_pad"]
    weight_args = fused["args"]
    kernel = _make_fused_kernel(fused["meta"])

    # Explicit VMEM budget: resident weights + double-buffered row tiles,
    # clamped so the request also fits v7x's 64 MiB physical VMEM.
    weight_bytes = sum(int(a.size) * a.dtype.itemsize for a in weight_args)
    io_bytes = tile_n * (d_in + out_pad) * x.dtype.itemsize
    est = 2 * weight_bytes + 4 * io_bytes + (8 << 20)
    vmem_limit = int(min(56 << 20, max(32 << 20, est)))

    def _call(single_buffer_weights):
        in_specs = [_row_spec(tile_n, d_in)] + [
            _const_spec(tuple(a.shape), single_buffer_weights)
            for a in weight_args
        ]
        return pl.pallas_call(
            kernel,
            out_shape=jax.ShapeDtypeStruct((n, out_pad), x.dtype),
            grid=grid,
            in_specs=in_specs,
            out_specs=_row_spec(tile_n, out_pad),
            compiler_params=pltpu.CompilerParams(
                dimension_semantics=("parallel",),
                vmem_limit_bytes=vmem_limit),
        )(x, *weight_args)

    try:
        y = _call(True)
    except Exception:
        # pipeline_mode=pl.Buffered(1) unsupported on this JAX version:
        # fall back to default double-buffered weight blocks.
        y = _call(False)

    return y[:, :fused["out_dim"]]   # strip lane padding outside the kernel


# ---------------------------------------------------------------------------
# Parameter construction + pure-JAX reference (mirrors the PyTorch module)
# ---------------------------------------------------------------------------
def init_params(key, internal_elem_dim, output_dim, hidden_layer_dims):
    dims = [internal_elem_dim] + list(hidden_layer_dims)
    params = {"fcs": [], "res_fcs": []}
    for i in range(len(dims) - 1):
        d_in, d_out = dims[i], dims[i + 1]
        key, kw, kb, kr = jax.random.split(key, 4)
        scale = 1.0 / jnp.sqrt(d_in)
        w = jax.random.uniform(kw, (d_in, d_out), jnp.float32, -scale, scale)
        b = jax.random.uniform(kb, (1, d_out), jnp.float32, -scale, scale)
        params["fcs"].append((w, b))
        if d_in != d_out:
            w_res = jax.random.uniform(kr, (d_in, d_out), jnp.float32, -scale, scale)
        else:
            w_res = None  # nn.Identity()
        params["res_fcs"].append(w_res)
    key, kw, kb = jax.random.split(key, 3)
    scale = 1.0 / jnp.sqrt(dims[-1])
    params["fc_out"] = (
        jax.random.uniform(kw, (dims[-1], output_dim), jnp.float32, -scale, scale),
        jax.random.uniform(kb, (1, output_dim), jnp.float32, -scale, scale),
    )
    return params


def reference_forward(params, x):
    """Pure-JAX f32 reference with the module's exact semantics."""
    for (w, b), w_res in zip(params["fcs"], params["res_fcs"]):
        h = x @ w + b
        h = jnp.where(h >= 0, h, NEGATIVE_SLOPE * h)
        res = x if w_res is None else x @ w_res
        x = h + res
    w_out, b_out = params["fc_out"]
    return x @ w_out + b_out


if __name__ == "__main__":
    key = jax.random.PRNGKey(0)

    # Small shapes consistent with the module:
    #   input (N, internal_elem_dim) = (8, 32)
    #   hidden_layer_dims = [64, 64]  (layer 0: projected residual,
    #                                  layer 1: identity residual)
    #   output_dim = 16
    internal_elem_dim, output_dim, hidden_layer_dims = 32, 16, [64, 64]
    n = 8

    key, kp, kx = jax.random.split(key, 3)
    params = init_params(kp, internal_elem_dim, output_dim, hidden_layer_dims)
    fused = prepare_fused_params(params)            # one-time prep (pad/concat/bf16)
    x = jax.random.normal(kx, (n, internal_elem_dim), jnp.float32)

    out = jax.block_until_ready(residual_network_forward(fused, x))
    ref = reference_forward(params, x)

    assert out.shape == (n, output_dim)
    # bf16 MXU operands (f32 accumulation) -> loosened tolerance vs f32 reference.
    assert jnp.allclose(out, ref, atol=2e-2, rtol=2e-2)
    print("KERNEL_OK")
</pallas_src>

<mosaic_0001>
module attributes {stable_mosaic.version = 11 : i64} {
  func.func @kernel(%arg0: i32, %arg1: memref<8x32xf32, #tpu.memory_space<vmem>>, %arg2: memref<32x256xbf16, #tpu.memory_space<vmem>>, %arg3: memref<1x128xf32, #tpu.memory_space<vmem>>, %arg4: memref<128x128xbf16, #tpu.memory_space<vmem>>, %arg5: memref<1x128xf32, #tpu.memory_space<vmem>>, %arg6: memref<128x128xbf16, #tpu.memory_space<vmem>>, %arg7: memref<1x128xf32, #tpu.memory_space<vmem>>, %arg8: memref<8x128xf32, #tpu.memory_space<vmem>>) attributes {dimension_semantics = [#tpu.dimension_semantics<parallel>], iteration_bounds = array<i64: 1>, scalar_prefetch = 0 : i64, scratch_operands = 0 : i64, tpu.core_type = #tpu.core_type<tc>, window_params = [{transform_indices = @transform_0, window_bounds = array<i64: 8, 32>}, {pipeline_mode = #tpu.pipeline_mode<synchronous>, transform_indices = @transform_1, window_bounds = array<i64: 32, 256>}, {pipeline_mode = #tpu.pipeline_mode<synchronous>, transform_indices = @transform_2, window_bounds = array<i64: 1, 128>}, {pipeline_mode = #tpu.pipeline_mode<synchronous>, transform_indices = @transform_3, window_bounds = array<i64: 128, 128>}, {pipeline_mode = #tpu.pipeline_mode<synchronous>, transform_indices = @transform_4, window_bounds = array<i64: 1, 128>}, {pipeline_mode = #tpu.pipeline_mode<synchronous>, transform_indices = @transform_5, window_bounds = array<i64: 128, 128>}, {pipeline_mode = #tpu.pipeline_mode<synchronous>, transform_indices = @transform_6, window_bounds = array<i64: 1, 128>}, {transform_indices = @transform_7, window_bounds = array<i64: 8, 128>}]} {
    %c0 = arith.constant 0 : index
    %c0_0 = arith.constant 0 : index
    %0 = vector.load %arg1[%c0, %c0_0] : memref<8x32xf32, #tpu.memory_space<vmem>>, vector<8x32xf32>
    %c0_1 = arith.constant 0 : index
    %c0_2 = arith.constant 0 : index
    %1 = vector.load %arg2[%c0_1, %c0_2] : memref<32x256xbf16, #tpu.memory_space<vmem>>, vector<32x256xbf16>
    %c0_3 = arith.constant 0 : index
    %c0_4 = arith.constant 0 : index
    %2 = vector.load %arg3[%c0_3, %c0_4] : memref<1x128xf32, #tpu.memory_space<vmem>>, vector<1x128xf32>
    %3 = arith.truncf %0 : vector<8x32xf32> to vector<8x32xbf16>
    %cst = arith.constant dense<0.000000e+00> : vector<8x256xf32>
    %4 = tpu.matmul %3, %1, %cst {dimension_numbers = #tpu.dot_dimension_numbers<[1], [0], [0], [1], [0, 0, 1, 1], [], []>} : vector<8x32xbf16>, vector<32x256xbf16>, vector<8x256xf32> -> vector<8x256xf32>
    %5 = vector.extract_strided_slice %4 {offsets = [0, 0], sizes = [8, 128], strides = [1, 1]} : vector<8x256xf32> to vector<8x128xf32>
    %6 = vector.broadcast %2 : vector<1x128xf32> to vector<8x128xf32>
    %7 = arith.addf %5, %6 : vector<8x128xf32>
    %8 = vector.extract_strided_slice %4 {offsets = [0, 128], sizes = [8, 128], strides = [1, 1]} : vector<8x256xf32> to vector<8x128xf32>
    %cst_5 = arith.constant 0.000000e+00 : f32
    %9 = vector.broadcast %cst_5 : f32 to vector<8x128xf32>
    %10 = arith.cmpf oge, %7, %9 : vector<8x128xf32>
    %cst_6 = arith.constant 2.000000e-01 : f32
    %11 = vector.broadcast %cst_6 : f32 to vector<8x128xf32>
    %12 = arith.mulf %11, %7 : vector<8x128xf32>
    %13 = arith.select %10, %7, %12 : vector<8x128xi1>, vector<8x128xf32>
    %14 = arith.addf %13, %8 : vector<8x128xf32>
    %c0_7 = arith.constant 0 : index
    %c0_8 = arith.constant 0 : index
    %15 = vector.load %arg4[%c0_7, %c0_8] : memref<128x128xbf16, #tpu.memory_space<vmem>>, vector<128x128xbf16>
    %c0_9 = arith.constant 0 : index
    %c0_10 = arith.constant 0 : index
    %16 = vector.load %arg5[%c0_9, %c0_10] : memref<1x128xf32, #tpu.memory_space<vmem>>, vector<1x128xf32>
    %17 = arith.truncf %14 : vector<8x128xf32> to vector<8x128xbf16>
    %cst_11 = arith.constant dense<0.000000e+00> : vector<8x128xf32>
    %18 = tpu.matmul %17, %15, %cst_11 {dimension_numbers = #tpu.dot_dimension_numbers<[1], [0], [0], [1], [0, 0, 1, 1], [], []>} : vector<8x128xbf16>, vector<128x128xbf16>, vector<8x128xf32> -> vector<8x128xf32>
    %19 = vector.broadcast %16 : vector<1x128xf32> to vector<8x128xf32>
    %20 = arith.addf %18, %19 : vector<8x128xf32>
    %cst_12 = arith.constant 0.000000e+00 : f32
    %21 = vector.broadcast %cst_12 : f32 to vector<8x128xf32>
    %22 = arith.cmpf oge, %20, %21 : vector<8x128xf32>
    %cst_13 = arith.constant 2.000000e-01 : f32
    %23 = vector.broadcast %cst_13 : f32 to vector<8x128xf32>
    %24 = arith.mulf %23, %20 : vector<8x128xf32>
    %25 = arith.select %22, %20, %24 : vector<8x128xi1>, vector<8x128xf32>
    %26 = arith.addf %25, %14 : vector<8x128xf32>
    %c0_14 = arith.constant 0 : index
    %c0_15 = arith.constant 0 : index
    %27 = vector.load %arg6[%c0_14, %c0_15] : memref<128x128xbf16, #tpu.memory_space<vmem>>, vector<128x128xbf16>
    %c0_16 = arith.constant 0 : index
    %c0_17 = arith.constant 0 : index
    %28 = vector.load %arg7[%c0_16, %c0_17] : memref<1x128xf32, #tpu.memory_space<vmem>>, vector<1x128xf32>
    %29 = arith.truncf %26 : vector<8x128xf32> to vector<8x128xbf16>
    %cst_18 = arith.constant dense<0.000000e+00> : vector<8x128xf32>
    %30 = tpu.matmul %29, %27, %cst_18 {dimension_numbers = #tpu.dot_dimension_numbers<[1], [0], [0], [1], [0, 0, 1, 1], [], []>} : vector<8x128xbf16>, vector<128x128xbf16>, vector<8x128xf32> -> vector<8x128xf32>
    %31 = vector.broadcast %28 : vector<1x128xf32> to vector<8x128xf32>
    %32 = arith.addf %30, %31 : vector<8x128xf32>
    %c0_19 = arith.constant 0 : index
    %c0_20 = arith.constant 0 : index
    %33 = vector.load %arg8[%c0_19, %c0_20] : memref<8x128xf32, #tpu.memory_space<vmem>>, vector<8x128xf32>
    tpu.vector_store %arg8[%c0_19, %c0_20], %32 {strides = array<i32>} : memref<8x128xf32, #tpu.memory_space<vmem>>, vector<8x128xf32>,
    return
  }
  func.func @transform_0(%arg0: i32) -> (i32, i32) {
    %c0_i32 = arith.constant 0 : i32
    %c0_i32_0 = arith.constant 0 : i32
    return %arg0, %c0_i32 : i32, i32
  }
  func.func @transform_1(%arg0: i32) -> (i32, i32) {
    %c0_i32 = arith.constant 0 : i32
    %c0_i32_0 = arith.constant 0 : i32
    %c0_i32_1 = arith.constant 0 : i32
    return %c0_i32, %c0_i32_0 : i32, i32
  }
  func.func @transform_2(%arg0: i32) -> (i32, i32) {
    %c0_i32 = arith.constant 0 : i32
    %c0_i32_0 = arith.constant 0 : i32
    %c0_i32_1 = arith.constant 0 : i32
    return %c0_i32, %c0_i32_0 : i32, i32
  }
  func.func @transform_3(%arg0: i32) -> (i32, i32) {
    %c0_i32 = arith.constant 0 : i32
    %c0_i32_0 = arith.constant 0 : i32
    %c0_i32_1 = arith.constant 0 : i32
    return %c0_i32, %c0_i32_0 : i32, i32
  }
  func.func @transform_4(%arg0: i32) -> (i32, i32) {
    %c0_i32 = arith.constant 0 : i32
    %c0_i32_0 = arith.constant 0 : i32
    %c0_i32_1 = arith.constant 0 : i32
    return %c0_i32, %c0_i32_0 : i32, i32
  }
  func.func @transform_5(%arg0: i32) -> (i32, i32) {
    %c0_i32 = arith.constant 0 : i32
    %c0_i32_0 = arith.constant 0 : i32
    %c0_i32_1 = arith.constant 0 : i32
    return %c0_i32, %c0_i32_0 : i32, i32
  }
  func.func @transform_6(%arg0: i32) -> (i32, i32) {
    %c0_i32 = arith.constant 0 : i32
    %c0_i32_0 = arith.constant 0 : i32
    %c0_i32_1 = arith.constant 0 : i32
    return %c0_i32, %c0_i32_0 : i32, i32
  }
  func.func @transform_7(%arg0: i32) -> (i32, i32) {
    %c0_i32 = arith.constant 0 : i32
    %c0_i32_0 = arith.constant 0 : i32
    return %arg0, %c0_i32 : i32, i32
  }
}

module attributes {stable_mosaic.version = 11 : i64} {
  func.func @kernel(%arg0: i32, %arg1: memref<8x32xf32, #tpu.memory_space<vmem>>, %arg2: memref<32x256xbf16, #tpu.memory_space<vmem>>, %arg3: memref<1x128xf32, #tpu.memory_space<vmem>>, %arg4: memref<128x128xbf16, #tpu.memory_space<vmem>>, %arg5: memref<1x128xf32, #tpu.memory_space<vmem>>, %arg6: memref<128x128xbf16, #tpu.memory_space<vmem>>, %arg7: memref<1x128xf32, #tpu.memory_space<vmem>>, %arg8: memref<8x128xf32, #tpu.memory_space<vmem>>) attributes {dimension_semantics = [#tpu.dimension_semantics<parallel>], iteration_bounds = array<i64: 1>, scalar_prefetch = 0 : i64, scratch_operands = 0 : i64, tpu.core_type = #tpu.core_type<tc>, window_params = [{transform_indices = @transform_0, window_bounds = array<i64: 8, 32>}, {pipeline_mode = #tpu.pipeline_mode<synchronous>, transform_indices = @transform_1, window_bounds = array<i64: 32, 256>}, {pipeline_mode = #tpu.pipeline_mode<synchronous>, transform_indices = @transform_2, window_bounds = array<i64: 1, 128>}, {pipeline_mode = #tpu.pipeline_mode<synchronous>, transform_indices = @transform_3, window_bounds = array<i64: 128, 128>}, {pipeline_mode = #tpu.pipeline_mode<synchronous>, transform_indices = @transform_4, window_bounds = array<i64: 1, 128>}, {pipeline_mode = #tpu.pipeline_mode<synchronous>, transform_indices = @transform_5, window_bounds = array<i64: 128, 128>}, {pipeline_mode = #tpu.pipeline_mode<synchronous>, transform_indices = @transform_6, window_bounds = array<i64: 1, 128>}, {transform_indices = @transform_7, window_bounds = array<i64: 8, 128>}]} {
    %c0 = arith.constant 0 : index
    %c0_0 = arith.constant 0 : index
    %0 = vector.load %arg1[%c0, %c0_0] : memref<8x32xf32, #tpu.memory_space<vmem>>, vector<8x32xf32>
    %c0_1 = arith.constant 0 : index
    %c0_2 = arith.constant 0 : index
    %1 = vector.load %arg2[%c0_1, %c0_2] : memref<32x256xbf16, #tpu.memory_space<vmem>>, vector<32x256xbf16>
    %c0_3 = arith.constant 0 : index
    %c0_4 = arith.constant 0 : index
    %2 = vector.load %arg3[%c0_3, %c0_4] : memref<1x128xf32, #tpu.memory_space<vmem>>, vector<1x128xf32>
    %3 = arith.truncf %0 : vector<8x32xf32> to vector<8x32xbf16>
    %cst = arith.constant dense<0.000000e+00> : vector<8x256xf32>
    %4 = tpu.matmul %3, %1, %cst {dimension_numbers = #tpu.dot_dimension_numbers<[1], [0], [0], [1], [0, 0, 1, 1], [], []>} : vector<8x32xbf16>, vector<32x256xbf16>, vector<8x256xf32> -> vector<8x256xf32>
    %5 = vector.extract_strided_slice %4 {offsets = [0, 0], sizes = [8, 128], strides = [1, 1]} : vector<8x256xf32> to vector<8x128xf32>
    %6 = vector.broadcast %2 : vector<1x128xf32> to vector<8x128xf32>
    %7 = arith.addf %5, %6 : vector<8x128xf32>
    %8 = vector.extract_strided_slice %4 {offsets = [0, 128], sizes = [8, 128], strides = [1, 1]} : vector<8x256xf32> to vector<8x128xf32>
    %cst_5 = arith.constant 0.000000e+00 : f32
    %9 = vector.broadcast %cst_5 : f32 to vector<8x128xf32>
    %10 = arith.cmpf oge, %7, %9 : vector<8x128xf32>
    %cst_6 = arith.constant 2.000000e-01 : f32
    %11 = vector.broadcast %cst_6 : f32 to vector<8x128xf32>
    %12 = arith.mulf %11, %7 : vector<8x128xf32>
    %13 = arith.select %10, %7, %12 : vector<8x128xi1>, vector<8x128xf32>
    %14 = arith.addf %13, %8 : vector<8x128xf32>
    %c0_7 = arith.constant 0 : index
    %c0_8 = arith.constant 0 : index
    %15 = vector.load %arg4[%c0_7, %c0_8] : memref<128x128xbf16, #tpu.memory_space<vmem>>, vector<128x128xbf16>
    %c0_9 = arith.constant 0 : index
    %c0_10 = arith.constant 0 : index
    %16 = vector.load %arg5[%c0_9, %c0_10] : memref<1x128xf32, #tpu.memory_space<vmem>>, vector<1x128xf32>
    %17 = arith.truncf %14 : vector<8x128xf32> to vector<8x128xbf16>
    %cst_11 = arith.constant dense<0.000000e+00> : vector<8x128xf32>
    %18 = tpu.matmul %17, %15, %cst_11 {dimension_numbers = #tpu.dot_dimension_numbers<[1], [0], [0], [1], [0, 0, 1, 1], [], []>} : vector<8x128xbf16>, vector<128x128xbf16>, vector<8x128xf32> -> vector<8x128xf32>
    %19 = vector.broadcast %16 : vector<1x128xf32> to vector<8x128xf32>
    %20 = arith.addf %18, %19 : vector<8x128xf32>
    %cst_12 = arith.constant 0.000000e+00 : f32
    %21 = vector.broadcast %cst_12 : f32 to vector<8x128xf32>
    %22 = arith.cmpf oge, %20, %21 : vector<8x128xf32>
    %cst_13 = arith.constant 2.000000e-01 : f32
    %23 = vector.broadcast %cst_13 : f32 to vector<8x128xf32>
    %24 = arith.mulf %23, %20 : vector<8x128xf32>
    %25 = arith.select %22, %20, %24 : vector<8x128xi1>, vector<8x128xf32>
    %26 = arith.addf %25, %14 : vector<8x128xf32>
    %c0_14 = arith.constant 0 : index
    %c0_15 = arith.constant 0 : index
    %27 = vector.load %arg6[%c0_14, %c0_15] : memref<128x128xbf16, #tpu.memory_space<vmem>>, vector<128x128xbf16>
    %c0_16 = arith.constant 0 : index
    %c0_17 = arith.constant 0 : index
    %28 = vector.load %arg7[%c0_16, %c0_17] : memref<1x128xf32, #tpu.memory_space<vmem>>, vector<1x128xf32>
    %29 = arith.truncf %26 : vector<8x128xf32> to vector<8x128xbf16>
    %cst_18 = arith.constant dense<0.000000e+00> : vector<8x128xf32>
    %30 = tpu.matmul %29, %27, %cst_18 {dimension_numbers = #tpu.dot_dimension_numbers<[1], [0], [0], [1], [0, 0, 1, 1], [], []>} : vector<8x128xbf16>, vector<128x128xbf16>, vector<8x128xf32> -> vector<8x128xf32>
    %31 = vector.broadcast %28 : vector<1x128xf32> to vector<8x128xf32>
    %32 = arith.addf %30, %31 : vector<8x128xf32>
    %c0_19 = arith.constant 0 : index
    %c0_20 = arith.constant 0 : index
    %33 = vector.load %arg8[%c0_19, %c0_20] : memref<8x128xf32, #tpu.memory_space<vmem>>, vector<8x128xf32>
    tpu.vector_store %arg8[%c0_19, %c0_20], %32 {strides = array<i32>} : memref<8x128xf32, #tpu.memory_space<vmem>>, vector<8x128xf32>,
    return
  }
  func.func @transform_0(%arg0: i32) -> (i32, i32) {
    %c0_i32 = arith.constant 0 : i32
    %c0_i32_0 = arith.constant 0 : i32
    return %arg0, %c0_i32 : i32, i32
  }
  func.func @transform_1(%arg0: i32) -> (i32, i32) {
    %c0_i32 = arith.constant 0 : i32
    %c0_i32_0 = arith.constant 0 : i32
    %c0_i32_1 = arith.constant 0 : i32
    return %c0_i32, %c0_i32_0 : i32, i32
  }
  func.func @transform_2(%arg0: i32) -> (i32, i32) {
    %c0_i32 = arith.constant 0 : i32
    %c0_i32_0 = arith.constant 0 : i32
    %c0_i32_1 = arith.constant 0 : i32
    return %c0_i32, %c0_i32_0 : i32, i32
  }
  func.func @transform_3(%arg0: i32) -> (i32, i32) {
    %c0_i32 = arith.constant 0 : i32
    %c0_i32_0 = arith.constant 0 : i32
    %c0_i32_1 = arith.constant 0 : i32
    return %c0_i32, %c0_i32_0 : i32, i32
  }
  func.func @transform_4(%arg0: i32) -> (i32, i32) {
    %c0_i32 = arith.constant 0 : i32
    %c0_i32_0 = arith.constant 0 : i32
    %c0_i32_1 = arith.constant 0 : i32
    return %c0_i32, %c0_i32_0 : i32, i32
  }
  func.func @transform_5(%arg0: i32) -> (i32, i32) {
    %c0_i32 = arith.constant 0 : i32
    %c0_i32_0 = arith.constant 0 : i32
    %c0_i32_1 = arith.constant 0 : i32
    return %c0_i32, %c0_i32_0 : i32, i32
  }
  func.func @transform_6(%arg0: i32) -> (i32, i32) {
    %c0_i32 = arith.constant 0 : i32
    %c0_i32_0 = arith.constant 0 : i32
    %c0_i32_1 = arith.constant 0 : i32
    return %c0_i32, %c0_i32_0 : i32, i32
  }
  func.func @transform_7(%arg0: i32) -> (i32, i32) {
    %c0_i32 = arith.constant 0 : i32
    %c0_i32_0 = arith.constant 0 : i32
    return %arg0, %c0_i32 : i32, i32
  }
}

</mosaic_0001>

<bundles_post_ra>
// kernel: tpu_custom_call.1
= control target key start
LH: loop header
LB: loop body
LE: loop exit
PB: predicated region body
PF: predicated region fallthrough
CT: control target
= control target key end

     0   :  { %12 = vsyncpa [#allocation3], 0  ;;  %s657_s0 = inlined_call_operand.hbm [shape: f32[8,32], index: 0, kind: input, shape index: {}]   ;;  %s658_s1 = inlined_call_operand.hbm [shape: bf16[32,256], index: 1, kind: input, shape index: {}]   ;;  %s659_s2 = inlined_call_operand.vmem [shape: f32[1,128], index: 2, kind: input, shape index: {}]   ;;  %s660_s3 = inlined_call_operand.hbm [shape: bf16[128,128], index: 3, kind: input, shape index: {}]   ;;  %s661_s4 = inlined_call_operand.vmem [shape: f32[1,128], index: 4, kind: input, shape index: {}]   ;;  %s662_s5 = inlined_call_operand.hbm [shape: bf16[128,128], index: 5, kind: input, shape index: {}]   ;;  %s663_s6 = inlined_call_operand.vmem [shape: f32[1,128], index: 6, kind: input, shape index: {}]   ;;  %s664_s7 = inlined_call_operand.hbm [shape: f32[8,128], index: 7, kind: output, shape index: {}]  }
   0x1   :  { %13 = vsyncpa [#allocation6], 0 }
   0x2   :  { %14 = vsyncpa [#allocation9], 0  ;;  %s31_s26 = sshll.u32 %s658_s1, 4  ;;  %s32_s26 = int_to_ptr.hbm [resolvable:$true] %s31_s26 }
   0x3   :  { %15 = vsyncpa [#allocation4], 0  ;;  %s584_s27 = smov [#allocation5]   ;;  %s21_s8 = sshll.u32 %s657_s0, 4  ;;  %s22_s8 = int_to_ptr.hbm [resolvable:$true] %s21_s8 }
   0x4   :  { %s33_s28 = sshll.u32 %s584_s27, 4  ;;  %s585_s9 = smov 128   ;;  %s34_s28 = int_to_ptr.vmem [resolvable:$true] %s33_s28 }
   0x5   :  { %s586_s10 = smov 8   ;;  %s587_s11 = smov [#allocation2]  }
   0x6   :  { %39 = dma.hbm_to_vmem [thread:$0]  %s32_s26, 512, %s34_s28, [#allocation6], %s585_s9, %s585_s9, %s586_s10  }
   0x7   :  { %s23_s12 = sshll.u32 %s587_s11, 4  ;;  %s46_s15 = sshll.u32 %s660_s3, 4  ;;  %s24_s12 = int_to_ptr.vmem [resolvable:$true] %s23_s12  ;;  %s47_s15 = int_to_ptr.hbm [resolvable:$true] %s46_s15 }
   0x8   :  { %26 = dma.hbm_to_vmem [thread:$0]  %s22_s8, 128, %s24_s12, [#allocation3]  }
   0x9   :  { %s588_s1 = smov [#allocation7]   ;;  %s61_s0 = sshll.u32 %s662_s5, 4  ;;  %s62_s0 = int_to_ptr.hbm [resolvable:$true] %s61_s0 }
   0xa   :  { %s48_s16 = sshll.u32 %s588_s1, 4  ;;  %s589_s19 = smov 64   ;;  %s49_s16 = int_to_ptr.vmem [resolvable:$true] %s48_s16 }
   0xb   :  { %s590_s20 = smov 4   ;;  %s591_s21 = smov [#allocation8]  }
   0xc   :  { %54 = dma.hbm_to_vmem [thread:$0]  %s47_s15, 1024, %s49_s16, [#allocation6], %s589_s19, %s589_s19, %s590_s20  }
   0xd   :  { %s63_s22 = sshll.u32 %s591_s21, 4  ;;  %s64_s22 = int_to_ptr.vmem [resolvable:$true] %s63_s22 }
   0xe   :  { %69 = dma.hbm_to_vmem [thread:$0]  %s62_s0, 1024, %s64_s22, [#allocation9], %s589_s19, %s589_s19, %s590_s20  }
   0xf   :  { %576 = dma.done.wait [#allocation3], 128  }
  0x10   :  { %577 = vsyncadd [#allocation3], 4294967168 }
  0x11   :  { %578 = dma.done.wait [#allocation6], 1536  }
  0x12   :  { %579 = vsyncadd [#allocation6], 4294965760 }
  0x13   :  { %580 = dma.done.wait [#allocation9], 1024  }
  0x14   :  { %581 = vsyncadd [#allocation9], 4294966272  ;;  %v352_v0 = vld [vmem:[#allocation5 + $0x10] sm:$0xf]  ;;  %v427_v1 = vld [vmem:[#allocation5 + $0x14] sm:$0xf0] }
  0x15   :  { %v426_v2 = vld [vmem:[#allocation5 + $0x14] sm:$0xf]  ;;  %v353_v3 = vor.u32 %v427_v1, %v352_v0  ;;  %v354_v4 = vld [vmem:[#allocation5 + $0x18] sm:$0xf0]  ;;  %v344_v5 = vld [vmem:[#allocation5] sm:$0xf] }
  0x16   :  { %v425_v6 = vld [vmem:[#allocation5 + $0x4] sm:$0xf0]  ;;  %v357_v7 = vor.u32 %v426_v2, %v354_v4  ;;  %v424_v8 = vld [vmem:[#allocation5 + $0x4] sm:$0xf]  ;;  %v346_v9 = vld [vmem:[#allocation5 + $0x8] sm:$0xf0] }
  0x17   :  { %126 = vmatpush.bf16.msra.mxu0 %v353_v3  ;;  %v345_v10 = vor.u32 %v425_v6, %v344_v5  ;;  %v89_v11 = vld [vmem:[#allocation2] sm:$0xff]  ;;  %v349_v13 = vor.u32 %v424_v8, %v346_v9  ;;  %v434_v14 = vld [vmem:[#allocation7 + $0x30] sm:$0xff]  ;;  %vm116_vm0 = vcmask 261120   ;;  %v433_v16 = vld [vmem:[#allocation7 + $0x28] sm:$0xff]  ;;  %s592_s26 = smov [#allocation10]   ;;  %s330_s30 = sshll.u32 %s664_s7, 4  ;;  %s331_s30 = int_to_ptr.hbm [resolvable:$true] %s330_s30 }
  0x18   :  { %v435_v12 = vld [vmem:[#allocation7 + $0x38] sm:$0xff]  ;;  %139 = vmatpush.bf16.msra.mxu1 %v357_v7  ;;  %v95_v15 = vpack.c.bf16 %v89_v11, %v89_v11  ;;  %v432_v17 = vld [vmem:[#allocation7 + $0x20] sm:$0xff]  ;;  %v430_v19 = vld [vmem:[#allocation7 + $0x10] sm:$0xff]  ;;  %s328_s27 = sshll.u32 %s592_s26, 4  ;;  %s329_s27 = int_to_ptr.vmem [resolvable:$true] %s328_s27 }
  0x19   :  { %223 = vmatpush.bf16.msra.mxu2 %v435_v12  ;;  %v431_v18 = vld [vmem:[#allocation7 + $0x18] sm:$0xff]  ;;  %v429_v20 = vld [vmem:[#allocation7 + $0x8] sm:$0xff]  ;;  %v428_v21 = vld [vmem:[#allocation7] sm:$0xff] }
  0x1a   :  { %v443_v22 = vld [vmem:[#allocation8 + $0x38] sm:$0xff]  ;;  %v442_v23 = vld [vmem:[#allocation8 + $0x30] sm:$0xff]  ;;  %v441_v24 = vld [vmem:[#allocation8 + $0x28] sm:$0xff] }
  0x1b   :  { %127 = vmatpush.bf16.msra.mxu0 %v345_v10  ;;  %309 = vmatpush.bf16.msra.mxu3 %v443_v22  ;;  %v440_v25 = vld [vmem:[#allocation8 + $0x20] sm:$0xff]  ;;  %v439_v26 = vld [vmem:[#allocation8 + $0x18] sm:$0xff]  ;;  %v438_v27 = vld [vmem:[#allocation8 + $0x10] sm:$0xff] }
  0x1c   :  { %140 = vmatpush.bf16.msra.mxu1 %v349_v13  ;;  %v453_v28 = vld [vmem:[%s659_s2] ss:$0 sm:$0xff]  ;;  %v437_v38 = vld [vmem:[#allocation8 + $0x8] sm:$0xff]  ;;  %v436_v39 = vld [vmem:[#allocation8] sm:$0xff] }
  0x1d   :  { %224 = vmatpush.bf16.msra.mxu2 %v434_v14  ;;  %v454_v40 = vld [vmem:[%s661_s4] ss:$0 sm:$0xff] }
  0x1e   :  { %358 = vmatmul.msk.bf16.vlgmr.msra.gmra.mxu0 %vm116_vm0, %v95_v15  ;;  %v455_v48 = vld [vmem:[%s663_s6] ss:$0 sm:$0xff] }
  0x1f   :  { %359 = vmatmul.msk.bf16.vlgmr.msra.gmra.mxu1 %vm116_vm0, %v95_v15  ;;  %310 = vmatpush.bf16.msra.mxu3 %v442_v23 }
  0x21   :  { %225 = vmatpush.bf16.msra.mxu2 %v433_v16 }
  0x23   :  { %311 = vmatpush.bf16.msra.mxu3 %v441_v24 }
  0x25   :  { %226 = vmatpush.bf16.msra.mxu2 %v432_v17 }
  0x27   :  { %312 = vmatpush.bf16.msra.mxu3 %v440_v25 }
  0x29   :  { %227 = vmatpush.bf16.msra.mxu2 %v431_v18 }
  0x2b   :  { %313 = vmatpush.bf16.msra.mxu3 %v439_v26 }
  0x2d   :  { %228 = vmatpush.bf16.msra.mxu2 %v430_v19 }
  0x2f   :  { %314 = vmatpush.bf16.msra.mxu3 %v438_v27 }
  0x31   :  { %229 = vmatpush.bf16.msra.mxu2 %v429_v20 }
  0x33   :  { %315 = vmatpush.bf16.msra.mxu3 %v437_v38 }
  0x35   :  { %230 = vmatpush.bf16.msra.mxu2 %v428_v21 }
  0x37   :  { %316 = vmatpush.bf16.msra.mxu3 %v436_v39 }
  0x9b   :  { %v129_v29 = vpop.f32.mrf.mxu0 }
  0x9c   :  { %v149_v30 = vadd.f32 %v453_v28, %v129_v29  ;;  %v142_v31 = vpop.f32.mrf.mxu1 }
  0x9e   :  { %v151_v32 = vmul.f32 0.2, %v149_v30  ;;  %vm150_vm1 = vcmp.ge.f32.partialorder %v149_v30, 0.0 }
  0xa0   :  { %v152_v33 = vsel %vm150_vm1, %v149_v30, %v151_v32 }
  0xa1   :  { %v153_v34 = vadd.f32 %v152_v33, %v142_v31 }
  0xa3   :  { %v131_v35 = vpop.f32.mrf.mxu0  ;;  %v171_v36 = vpack.c.bf16 %v153_v34, %v153_v34 }
  0xa4   :  { %v144_v37 = vpop.f32.mrf.mxu1 }
  0xa5   :  { %231 = vmatmul.bf16.vlgmr.msra.gmra.mxu2 %v171_v36 }
 0x128   :  { %v232_v41 = vpop.f32.mrf.mxu2 }
 0x129   :  { %v233_v42 = vadd.f32 %v454_v40, %v232_v41 }
 0x12b   :  { %vm236_vm2 = vcmp.ge.f32.partialorder %v233_v42, 0.0  ;;  %v237_v43 = vmul.f32 0.2, %v233_v42 }
 0x12d   :  { %v238_v44 = vsel %vm236_vm2, %v233_v42, %v237_v43 }
 0x12e   :  { %v239_v45 = vadd.f32 %v238_v44, %v153_v34 }
 0x130   :  { %v234_v46 = vpop.f32.mrf.mxu2  ;;  %v257_v47 = vpack.c.bf16 %v239_v45, %v239_v45 }
 0x132   :  { %317 = vmatmul.bf16.vlgmr.msra.gmra.mxu3 %v257_v47 }
 0x1b5   :  { %v318_v49 = vpop.f32.mrf.mxu3 }
 0x1b6   :  { %v319_v50 = vadd.f32 %v455_v48, %v318_v49 }
 0x1b8   :  { %322 = vst [vmem:[#allocation10] sm:$0xff] %v319_v50 }
 0x1b9   :  { %333 = dma.vmem_to_hbm [thread:$0]  %s329_s27, 128, %s331_s30, [#allocation4]  }
 0x1bd   :  { %v320_v51 = vpop.f32.mrf.mxu3 }
 0x1be   :  { %582 = dma.done.wait [#allocation4], 128  }
 0x1bf   :  { %583 = vsyncadd [#allocation4], 4294967168 }
 0x1c0   :  { %338 = vsyncpa [#allocation3], 1 }
 0x1c1   :  { %339 = vsyncpa [#allocation6], 1 }
 0x1c2   :  { %340 = vsyncpa [#allocation9], 1 }
 0x1c3   :  { %341 = vsyncpa [#allocation4], 1 }

// kernel: tpu_custom_call.1
= control target key start
LH: loop header
LB: loop body
LE: loop exit
PB: predicated region body
PF: predicated region fallthrough
CT: control target
= control target key end

     0   :  { %12 = vsyncpa [#allocation3], 0  ;;  %s657_s0 = inlined_call_operand.hbm [shape: f32[8,32], index: 0, kind: input, shape index: {}]   ;;  %s658_s1 = inlined_call_operand.hbm [shape: bf16[32,256], index: 1, kind: input, shape index: {}]   ;;  %s659_s2 = inlined_call_operand.vmem [shape: f32[1,128], index: 2, kind: input, shape index: {}]   ;;  %s660_s3 = inlined_call_operand.hbm [shape: bf16[128,128], index: 3, kind: input, shape index: {}]   ;;  %s661_s4 = inlined_call_operand.vmem [shape: f32[1,128], index: 4, kind: input, shape index: {}]   ;;  %s662_s5 = inlined_call_operand.hbm [shape: bf16[128,128], index: 5, kind: input, shape index: {}]   ;;  %s663_s6 = inlined_call_operand.vmem [shape: f32[1,128], index: 6, kind: input, shape index: {}]   ;;  %s664_s7 = inlined_call_operand.hbm [shape: f32[8,128], index: 7, kind: output, shape index: {}]  }
   0x1   :  { %13 = vsyncpa [#allocation6], 0 }
   0x2   :  { %14 = vsyncpa [#allocation9], 0  ;;  %s31_s26 = sshll.u32 %s658_s1, 4  ;;  %s32_s26 = int_to_ptr.hbm [resolvable:$true] %s31_s26 }
   0x3   :  { %15 = vsyncpa [#allocation4], 0  ;;  %s584_s27 = smov [#allocation5]   ;;  %s21_s8 = sshll.u32 %s657_s0, 4  ;;  %s22_s8 = int_to_ptr.hbm [resolvable:$true] %s21_s8 }
   0x4   :  { %s33_s28 = sshll.u32 %s584_s27, 4  ;;  %s585_s9 = smov 128   ;;  %s34_s28 = int_to_ptr.vmem [resolvable:$true] %s33_s28 }
   0x5   :  { %s586_s10 = smov 8   ;;  %s587_s11 = smov [#allocation2]  }
   0x6   :  { %39 = dma.hbm_to_vmem [thread:$0]  %s32_s26, 512, %s34_s28, [#allocation6], %s585_s9, %s585_s9, %s586_s10  }
   0x7   :  { %s23_s12 = sshll.u32 %s587_s11, 4  ;;  %s46_s15 = sshll.u32 %s660_s3, 4  ;;  %s24_s12 = int_to_ptr.vmem [resolvable:$true] %s23_s12  ;;  %s47_s15 = int_to_ptr.hbm [resolvable:$true] %s46_s15 }
   0x8   :  { %26 = dma.hbm_to_vmem [thread:$0]  %s22_s8, 128, %s24_s12, [#allocation3]  }
   0x9   :  { %s588_s1 = smov [#allocation7]   ;;  %s61_s0 = sshll.u32 %s662_s5, 4  ;;  %s62_s0 = int_to_ptr.hbm [resolvable:$true] %s61_s0 }
   0xa   :  { %s48_s16 = sshll.u32 %s588_s1, 4  ;;  %s589_s19 = smov 64   ;;  %s49_s16 = int_to_ptr.vmem [resolvable:$true] %s48_s16 }
   0xb   :  { %s590_s20 = smov 4   ;;  %s591_s21 = smov [#allocation8]  }
   0xc   :  { %54 = dma.hbm_to_vmem [thread:$0]  %s47_s15, 1024, %s49_s16, [#allocation6], %s589_s19, %s589_s19, %s590_s20  }
   0xd   :  { %s63_s22 = sshll.u32 %s591_s21, 4  ;;  %s64_s22 = int_to_ptr.vmem [resolvable:$true] %s63_s22 }
   0xe   :  { %69 = dma.hbm_to_vmem [thread:$0]  %s62_s0, 1024, %s64_s22, [#allocation9], %s589_s19, %s589_s19, %s590_s20  }
   0xf   :  { %576 = dma.done.wait [#allocation3], 128  }
  0x10   :  { %577 = vsyncadd [#allocation3], 4294967168 }
  0x11   :  { %578 = dma.done.wait [#allocation6], 1536  }
  0x12   :  { %579 = vsyncadd [#allocation6], 4294965760 }
  0x13   :  { %580 = dma.done.wait [#allocation9], 1024  }
  0x14   :  { %581 = vsyncadd [#allocation9], 4294966272  ;;  %v352_v0 = vld [vmem:[#allocation5 + $0x10] sm:$0xf]  ;;  %v427_v1 = vld [vmem:[#allocation5 + $0x14] sm:$0xf0] }
  0x15   :  { %v426_v2 = vld [vmem:[#allocation5 + $0x14] sm:$0xf]  ;;  %v353_v3 = vor.u32 %v427_v1, %v352_v0  ;;  %v354_v4 = vld [vmem:[#allocation5 + $0x18] sm:$0xf0]  ;;  %v344_v5 = vld [vmem:[#allocation5] sm:$0xf] }
  0x16   :  { %v425_v6 = vld [vmem:[#allocation5 + $0x4] sm:$0xf0]  ;;  %v357_v7 = vor.u32 %v426_v2, %v354_v4  ;;  %v424_v8 = vld [vmem:[#allocation5 + $0x4] sm:$0xf]  ;;  %v346_v9 = vld [vmem:[#allocation5 + $0x8] sm:$0xf0] }
  0x17   :  { %126 = vmatpush.bf16.msra.mxu0 %v353_v3  ;;  %v345_v10 = vor.u32 %v425_v6, %v344_v5  ;;  %v89_v11 = vld [vmem:[#allocation2] sm:$0xff]  ;;  %v349_v13 = vor.u32 %v424_v8, %v346_v9  ;;  %v434_v14 = vld [vmem:[#allocation7 + $0x30] sm:$0xff]  ;;  %vm116_vm0 = vcmask 261120   ;;  %v433_v16 = vld [vmem:[#allocation7 + $0x28] sm:$0xff]  ;;  %s592_s26 = smov [#allocation10]   ;;  %s330_s30 = sshll.u32 %s664_s7, 4  ;;  %s331_s30 = int_to_ptr.hbm [resolvable:$true] %s330_s30 }
  0x18   :  { %v435_v12 = vld [vmem:[#allocation7 + $0x38] sm:$0xff]  ;;  %139 = vmatpush.bf16.msra.mxu1 %v357_v7  ;;  %v95_v15 = vpack.c.bf16 %v89_v11, %v89_v11  ;;  %v432_v17 = vld [vmem:[#allocation7 + $0x20] sm:$0xff]  ;;  %v430_v19 = vld [vmem:[#allocation7 + $0x10] sm:$0xff]  ;;  %s328_s27 = sshll.u32 %s592_s26, 4  ;;  %s329_s27 = int_to_ptr.vmem [resolvable:$true] %s328_s27 }
  0x19   :  { %223 = vmatpush.bf16.msra.mxu2 %v435_v12  ;;  %v431_v18 = vld [vmem:[#allocation7 + $0x18] sm:$0xff]  ;;  %v429_v20 = vld [vmem:[#allocation7 + $0x8] sm:$0xff]  ;;  %v428_v21 = vld [vmem:[#allocation7] sm:$0xff] }
  0x1a   :  { %v443_v22 = vld [vmem:[#allocation8 + $0x38] sm:$0xff]  ;;  %v442_v23 = vld [vmem:[#allocation8 + $0x30] sm:$0xff]  ;;  %v441_v24 = vld [vmem:[#allocation8 + $0x28] sm:$0xff] }
  0x1b   :  { %127 = vmatpush.bf16.msra.mxu0 %v345_v10  ;;  %309 = vmatpush.bf16.msra.mxu3 %v443_v22  ;;  %v440_v25 = vld [vmem:[#allocation8 + $0x20] sm:$0xff]  ;;  %v439_v26 = vld [vmem:[#allocation8 + $0x18] sm:$0xff]  ;;  %v438_v27 = vld [vmem:[#allocation8 + $0x10] sm:$0xff] }
  0x1c   :  { %140 = vmatpush.bf16.msra.mxu1 %v349_v13  ;;  %v453_v28 = vld [vmem:[%s659_s2] ss:$0 sm:$0xff]  ;;  %v437_v38 = vld [vmem:[#allocation8 + $0x8] sm:$0xff]  ;;  %v436_v39 = vld [vmem:[#allocation8] sm:$0xff] }
  0x1d   :  { %224 = vmatpush.bf16.msra.mxu2 %v434_v14  ;;  %v454_v40 = vld [vmem:[%s661_s4] ss:$0 sm:$0xff] }
  0x1e   :  { %358 = vmatmul.msk.bf16.vlgmr.msra.gmra.mxu0 %vm116_vm0, %v95_v15  ;;  %v455_v48 = vld [vmem:[%s663_s6] ss:$0 sm:$0xff] }
  0x1f   :  { %359 = vmatmul.msk.bf16.vlgmr.msra.gmra.mxu1 %vm116_vm0, %v95_v15  ;;  %310 = vmatpush.bf16.msra.mxu3 %v442_v23 }
  0x21   :  { %225 = vmatpush.bf16.msra.mxu2 %v433_v16 }
  0x23   :  { %311 = vmatpush.bf16.msra.mxu3 %v441_v24 }
  0x25   :  { %226 = vmatpush.bf16.msra.mxu2 %v432_v17 }
  0x27   :  { %312 = vmatpush.bf16.msra.mxu3 %v440_v25 }
  0x29   :  { %227 = vmatpush.bf16.msra.mxu2 %v431_v18 }
  0x2b   :  { %313 = vmatpush.bf16.msra.mxu3 %v439_v26 }
  0x2d   :  { %228 = vmatpush.bf16.msra.mxu2 %v430_v19 }
  0x2f   :  { %314 = vmatpush.bf16.msra.mxu3 %v438_v27 }
  0x31   :  { %229 = vmatpush.bf16.msra.mxu2 %v429_v20 }
  0x33   :  { %315 = vmatpush.bf16.msra.mxu3 %v437_v38 }
  0x35   :  { %230 = vmatpush.bf16.msra.mxu2 %v428_v21 }
  0x37   :  { %316 = vmatpush.bf16.msra.mxu3 %v436_v39 }
  0x9b   :  { %v129_v29 = vpop.f32.mrf.mxu0 }
  0x9c   :  { %v149_v30 = vadd.f32 %v453_v28, %v129_v29  ;;  %v142_v31 = vpop.f32.mrf.mxu1 }
  0x9e   :  { %v151_v32 = vmul.f32 0.2, %v149_v30  ;;  %vm150_vm1 = vcmp.ge.f32.partialorder %v149_v30, 0.0 }
  0xa0   :  { %v152_v33 = vsel %vm150_vm1, %v149_v30, %v151_v32 }
  0xa1   :  { %v153_v34 = vadd.f32 %v152_v33, %v142_v31 }
  0xa3   :  { %v131_v35 = vpop.f32.mrf.mxu0  ;;  %v171_v36 = vpack.c.bf16 %v153_v34, %v153_v34 }
  0xa4   :  { %v144_v37 = vpop.f32.mrf.mxu1 }
  0xa5   :  { %231 = vmatmul.bf16.vlgmr.msra.gmra.mxu2 %v171_v36 }
 0x128   :  { %v232_v41 = vpop.f32.mrf.mxu2 }
 0x129   :  { %v233_v42 = vadd.f32 %v454_v40, %v232_v41 }
 0x12b   :  { %vm236_vm2 = vcmp.ge.f32.partialorder %v233_v42, 0.0  ;;  %v237_v43 = vmul.f32 0.2, %v233_v42 }
 0x12d   :  { %v238_v44 = vsel %vm236_vm2, %v233_v42, %v237_v43 }
 0x12e   :  { %v239_v45 = vadd.f32 %v238_v44, %v153_v34 }
 0x130   :  { %v234_v46 = vpop.f32.mrf.mxu2  ;;  %v257_v47 = vpack.c.bf16 %v239_v45, %v239_v45 }
 0x132   :  { %317 = vmatmul.bf16.vlgmr.msra.gmra.mxu3 %v257_v47 }
 0x1b5   :  { %v318_v49 = vpop.f32.mrf.mxu3 }
 0x1b6   :  { %v319_v50 = vadd.f32 %v455_v48, %v318_v49 }
 0x1b8   :  { %322 = vst [vmem:[#allocation10] sm:$0xff] %v319_v50 }
 0x1b9   :  { %333 = dma.vmem_to_hbm [thread:$0]  %s329_s27, 128, %s331_s30, [#allocation4]  }
 0x1bd   :  { %v320_v51 = vpop.f32.mrf.mxu3 }
 0x1be   :  { %582 = dma.done.wait [#allocation4], 128  }
 0x1bf   :  { %583 = vsyncadd [#allocation4], 4294967168 }
 0x1c0   :  { %338 = vsyncpa [#allocation3], 1 }
 0x1c1   :  { %339 = vsyncpa [#allocation6], 1 }
 0x1c2   :  { %340 = vsyncpa [#allocation9], 1 }
 0x1c3   :  { %341 = vsyncpa [#allocation4], 1 }

</bundles_post_ra>
